<compile_context>
chip_gen: v6e
topology: v6e:2x2x1
jax: 0.10.0
libtpu: 0.0.40
codegen_flags: <defaults>
</compile_context>

<pallas_src>
import functools

import jax
import jax.numpy as jnp
from jax.experimental import pallas as pl
from jax.experimental.pallas import tpu as pltpu


def _bf16_representable(x):
    return x.astype(jnp.bfloat16).astype(jnp.float32)


# ------------------------------ fused kernel --------------------------------

def _resblock_kernel(x_ref, w1_ref, w2_ref, *rest,
                     Nb, H, W, Cin, Cout, PAD, has_downsample):
    if has_downsample:
        wd_ref, out_ref, xpad_ref, p_ref = rest
    else:
        out_ref, xpad_ref, p_ref = rest

    HW = H * W
    HWP = HW + 2 * PAD
    K1 = 9 * Cin + 1          # 9 taps * Cin channels + bias ("ones") row
    K2 = 9 * Cout + 1
    C_max = max(Cin, Cout)

    # Hoisted left/right edge masks (shared by every tap / image / im2col call).
    col = jax.lax.broadcasted_iota(jnp.int32, (1, HW), 1) % W
    mask_l = col >= 1          # valid pixels for tap ox = -1
    mask_r = col < (W - 1)     # valid pixels for tap ox = +1

    # Zero ONLY the halo columns, every step.  im2col never writes them, and
    # scratch is uninitialized per-core, so this tiny (C_max x PAD) store pair is
    # the cheapest safe init (a program_id==0 guard would miss the second core
    # when the parallel grid axis is split on v7x).
    zeros_halo = jnp.zeros((C_max, PAD), dtype=xpad_ref.dtype)
    xpad_ref[:, 0:PAD] = zeros_halo
    xpad_ref[:, PAD + HW:HWP] = zeros_halo

    ones_row = jnp.ones((1, Nb * HW), dtype=p_ref.dtype)

    def im2col(get_act, c):
        """get_act(i) -> (c, HW) bf16 activation of image i.
        Fills p_ref rows [0, 9*c) (tap-major, channel-minor) for lanes
        [i*HW, (i+1)*HW) and the bias 'ones' row at row 9*c."""
        for i in range(Nb):
            xpad_ref[0:c, PAD:PAD + HW] = get_act(i)
            t = 0
            for oy in (-1, 0, 1):
                for ox in (-1, 0, 1):
                    s = oy * W + ox
                    tap = xpad_ref[0:c, PAD + s:PAD + s + HW]
                    # Top/bottom spill lands in the flat zero halo; only pixels
                    # that wrap over the left/right image edge need masking.
                    if ox < 0:
                        tap = jnp.where(mask_l, tap, jnp.zeros_like(tap))
                    elif ox > 0:
                        tap = jnp.where(mask_r, tap, jnp.zeros_like(tap))
                    p_ref[t * c:t * c + c, i * HW:(i + 1) * HW] = tap
                    t += 1
        p_ref[9 * c:9 * c + 1, :] = ones_row

    def conv(w_ref, patches):
        # Single (Cout, K) @ (K, Nb*HW) MXU matmul; bias rides in the last
        # weight column against the ones row.  bf16 operands, f32 accumulation.
        return jnp.dot(w_ref[...], patches, preferred_element_type=jnp.float32)

    if has_downsample:
        # Raw-x patches shared by the downsample conv (raw) and conv1 (ReLU'd).
        im2col(lambda i: x_ref[i].astype(jnp.bfloat16), Cin)
        p1 = p_ref[0:K1, :]
        skip = conv(wd_ref, p1)                              # downsample(x)
        for i in range(Nb):                                  # retire skip now
            out_ref[i] = skip[:, i * HW:(i + 1) * HW]
        r = conv(w1_ref, jnp.maximum(p1, 0.0))               # conv1(relu(x)); relu(1)=1
    else:
        # Identity skip (Cin == Cout): ReLU x before im2col (9x cheaper than on patches).
        im2col(lambda i: jnp.maximum(x_ref[i], 0.0).astype(jnp.bfloat16), Cin)
        r = conv(w1_ref, p_ref[0:K1, :])                     # conv1(relu(x))

    # conv2(relu(r))
    im2col(lambda i: jnp.maximum(r[:, i * HW:(i + 1) * HW], 0.0).astype(jnp.bfloat16),
           Cout)
    r2 = conv(w2_ref, p_ref[0:K2, :])

    for i in range(Nb):
        if has_downsample:
            out_ref[i] = out_ref[i] + r2[:, i * HW:(i + 1) * HW]
        else:
            out_ref[i] = x_ref[i] + r2[:, i * HW:(i + 1) * HW]


# ---------------------------- wrapper / packing ------------------------------

def _pack_conv(w_hwio, b):
    """HWIO (3,3,Cin,Cout) + (Cout,) bias -> bf16 (Cout, 9*Cin + 1):
    tap-major / channel-minor columns (matching the kernel's im2col rows),
    bias in the last column (pairs with the ones row)."""
    kh, kw, cin, cout = w_hwio.shape
    w = jnp.transpose(w_hwio, (3, 0, 1, 2)).reshape(cout, kh * kw * cin)
    wb = jnp.concatenate([w, b.reshape(cout, 1)], axis=1)
    return wb.astype(jnp.bfloat16)


def resblock_forward_pallas(x_nchw, params):
    """Matches ResBlock.forward (stride=1): r = conv2(relu(conv1(relu(x))));
       skip = downsample(x) if present else x; return skip + r."""
    N, Cin, H, W = x_nchw.shape
    Cout = params["w1"].shape[-1]
    HW = H * W
    PAD = W + 1                        # flat halo: one image row + one pixel each side
    HWP = HW + 2 * PAD
    has_ds = "wd" in params
    K1 = 9 * Cin + 1
    K2 = 9 * Cout + 1
    K_max = 9 * max(Cin, Cout) + 1
    C_max = max(Cin, Cout)

    # Fold images into the matmul lane dimension (amortizes weight push /
    # per-step overhead on v5e/v6e) but keep >= 2 parallel grid steps so both
    # v7x TensorCores get work.
    Nb = N // 2 if (N >= 2 and N % 2 == 0) else 1
    grid = (N // Nb,)

    x_flat = x_nchw.reshape(N, Cin, HW).astype(jnp.float32)   # free reshape, no transpose
    args = [x_flat,
            _pack_conv(params["w1"], params["b1"]),
            _pack_conv(params["w2"], params["b2"])]
    in_specs = [
        pl.BlockSpec((Nb, Cin, HW), lambda n: (n, 0, 0)),
        pl.BlockSpec((Cout, K1), lambda n: (0, 0)),
        pl.BlockSpec((Cout, K2), lambda n: (0, 0)),
    ]
    if has_ds:
        args.append(_pack_conv(params["wd"], params["bd"]))
        in_specs.append(pl.BlockSpec((Cout, K1), lambda n: (0, 0)))

    kernel = functools.partial(
        _resblock_kernel, Nb=Nb, H=H, W=W, Cin=Cin, Cout=Cout,
        PAD=PAD, has_downsample=has_ds)

    out_flat = pl.pallas_call(
        kernel,
        out_shape=jax.ShapeDtypeStruct((N, Cout, HW), jnp.float32),
        grid=grid,
        in_specs=in_specs,
        out_specs=pl.BlockSpec((Nb, Cout, HW), lambda n: (n, 0, 0)),
        scratch_shapes=[pltpu.VMEM((C_max, HWP), jnp.bfloat16),     # flat-padded activation
                        pltpu.VMEM((K_max, Nb * HW), jnp.bfloat16)],  # im2col patch matrix
        compiler_params=pltpu.CompilerParams(dimension_semantics=("parallel",)),
    )(*args)
    return out_flat.reshape(N, Cout, H, W)


# --------------------------------- params ------------------------------------

def init_resblock_params(key, indim, outdim=None):
    """Synthetic params (HWIO weights, (Cout,) biases), snapped to
    bf16-representable values so the f32 reference and the bf16-MXU kernel use
    exactly the same numbers (keeps the correctness check tight)."""
    if outdim is None:
        outdim = indim
    ks = jax.random.split(key, 6)

    def w(k, ci, co):
        return _bf16_representable(0.1 * jax.random.normal(k, (3, 3, ci, co), jnp.float32))

    def b(k, co):
        return _bf16_representable(0.1 * jax.random.normal(k, (co,), jnp.float32))

    p = {"w1": w(ks[0], indim, outdim), "b1": b(ks[1], outdim),
         "w2": w(ks[2], outdim, outdim), "b2": b(ks[3], outdim)}
    if indim != outdim:   # stride fixed at 1 -> downsample only when channel dims differ
        p["wd"] = w(ks[4], indim, outdim)
        p["bd"] = b(ks[5], outdim)
    return p


# ------------------------------- reference -----------------------------------

def _conv_ref(x_nchw, w_hwio, b):
    w_oihw = jnp.transpose(w_hwio, (3, 2, 0, 1))
    y = jax.lax.conv_general_dilated(
        x_nchw, w_oihw, window_strides=(1, 1), padding="SAME",
        dimension_numbers=("NCHW", "OIHW", "NCHW"))
    return y + b.reshape(1, -1, 1, 1)


def resblock_forward_ref(x_nchw, params):
    r = _conv_ref(jnp.maximum(x_nchw, 0.0), params["w1"], params["b1"])
    r = _conv_ref(jnp.maximum(r, 0.0), params["w2"], params["b2"])
    x = _conv_ref(x_nchw, params["wd"], params["bd"]) if "wd" in params else x_nchw
    return x + r


# --------------------------------- main ---------------------------------------

if __name__ == "__main__":
    key = jax.random.PRNGKey(0)
    k_x1, k_p1, k_x2, k_p2, k_x3 = jax.random.split(key, 5)

    def check(x, params, outdim):
        out = jax.block_until_ready(resblock_forward_pallas(x, params))
        ref = jax.block_until_ready(resblock_forward_ref(x, params))
        n, _, h, w = x.shape
        assert out.shape == (n, outdim, h, w), out.shape
        # Inputs/weights/biases are bf16-representable, so the only kernel-vs-f32
        # reference difference is the bf16 rounding of the conv2 input on the MXU
        # path plus f32 accumulation order; 2e-2 leaves a comfortable margin.
        err = float(jnp.max(jnp.abs(out - ref)))
        assert jnp.allclose(out, ref, rtol=2e-2, atol=2e-2), err

    H, W = 16, 16

    # Case 1: indim != outdim -> downsample conv on the skip path (N=2, Nb=1).
    x1 = _bf16_representable(jax.random.normal(k_x1, (2, 4, H, W), jnp.float32))
    check(x1, init_resblock_params(k_p1, 4, 8), 8)

    # Case 2: indim == outdim -> identity skip path (N=2, Nb=1).
    x2 = _bf16_representable(jax.random.normal(k_x2, (2, 8, H, W), jnp.float32))
    p2 = init_resblock_params(k_p2, 8)
    check(x2, p2, 8)

    # Case 3: batched-lane path (N=4 -> Nb=2 images folded into each grid step).
    x3 = _bf16_representable(jax.random.normal(k_x3, (4, 8, H, W), jnp.float32))
    check(x3, p2, 8)

    print("KERNEL_OK")
</pallas_src>

<mosaic_0001>
module attributes {stable_mosaic.version = 11 : i64} {
  func.func @_resblock_kernel(%arg0: i32, %arg1: memref<1x4x256xf32, #tpu.memory_space<vmem>>, %arg2: memref<8x37xbf16, #tpu.memory_space<vmem>>, %arg3: memref<8x73xbf16, #tpu.memory_space<vmem>>, %arg4: memref<8x37xbf16, #tpu.memory_space<vmem>>, %arg5: memref<1x8x256xf32, #tpu.memory_space<vmem>>, %arg6: memref<8x290xbf16, #tpu.memory_space<vmem>>, %arg7: memref<73x256xbf16, #tpu.memory_space<vmem>>) attributes {dimension_semantics = [#tpu.dimension_semantics<parallel>], iteration_bounds = array<i64: 2>, scalar_prefetch = 0 : i64, scratch_operands = 2 : i64, tpu.core_type = #tpu.core_type<tc>, window_params = [{transform_indices = @transform_0, window_bounds = array<i64: 1, 4, 256>}, {pipeline_mode = #tpu.pipeline_mode<synchronous>, transform_indices = @transform_1, window_bounds = array<i64: 8, 37>}, {pipeline_mode = #tpu.pipeline_mode<synchronous>, transform_indices = @transform_2, window_bounds = array<i64: 8, 73>}, {pipeline_mode = #tpu.pipeline_mode<synchronous>, transform_indices = @transform_3, window_bounds = array<i64: 8, 37>}, {transform_indices = @transform_4, window_bounds = array<i64: 1, 8, 256>}]} {
    %0 = tpu.iota {dimensions = array<i32: 1>} : vector<1x256xi32>
    %c16_i32 = arith.constant 16 : i32
    %c0_i32 = arith.constant 0 : i32
    %1 = arith.cmpi eq, %c16_i32, %c0_i32 : i32
    %c1_i32 = arith.constant 1 : i32
    %2 = arith.select %1, %c1_i32, %c16_i32 : i32
    %3 = vector.broadcast %2 : i32 to vector<1x256xi32>
    %4 = arith.remsi %0, %3 : vector<1x256xi32>
    %c0_i32_0 = arith.constant 0 : i32
    %5 = vector.broadcast %c0_i32_0 : i32 to vector<1x256xi32>
    %6 = arith.cmpi ne, %4, %5 : vector<1x256xi32>
    %c0_i32_1 = arith.constant 0 : i32
    %7 = vector.broadcast %c0_i32_1 : i32 to vector<1x256xi32>
    %8 = arith.cmpi slt, %4, %7 : vector<1x256xi32>
    %c0_i32_2 = arith.constant 0 : i32
    %9 = arith.cmpi slt, %2, %c0_i32_2 : i32
    %10 = vector.broadcast %9 : i1 to vector<1x256xi1>
    %11 = vector.broadcast %10 : vector<1x256xi1> to vector<1x256xi1>
    %12 = arith.xori %8, %11 : vector<1x256xi1>
    %13 = arith.andi %12, %6 : vector<1x256xi1>
    %14 = vector.broadcast %2 : i32 to vector<1x256xi32>
    %15 = arith.addi %4, %14 : vector<1x256xi32>
    %16 = arith.select %13, %15, %4 : vector<1x256xi1>, vector<1x256xi32>
    %c1_i32_3 = arith.constant 1 : i32
    %17 = vector.broadcast %c1_i32_3 : i32 to vector<1x256xi32>
    %18 = arith.cmpi sge, %16, %17 : vector<1x256xi32>
    %c15_i32 = arith.constant 15 : i32
    %19 = vector.broadcast %c15_i32 : i32 to vector<1x256xi32>
    %20 = arith.cmpi slt, %16, %19 : vector<1x256xi32>
    %cst = arith.constant 0.000000e+00 : bf16
    %21 = vector.broadcast %cst : bf16 to vector<8x17xbf16>
    %c0 = arith.constant 0 : index
    %c0_4 = arith.constant 0 : index
    %22 = vector.load %arg6[%c0, %c0_4] : memref<8x290xbf16, #tpu.memory_space<vmem>>, vector<8x17xbf16>
    tpu.vector_store %arg6[%c0, %c0_4], %21 {strides = array<i32>} : memref<8x290xbf16, #tpu.memory_space<vmem>>, vector<8x17xbf16>,
    %c0_5 = arith.constant 0 : index
    %c273 = arith.constant 273 : index
    %23 = vector.load %arg6[%c0_5, %c273] : memref<8x290xbf16, #tpu.memory_space<vmem>>, vector<8x17xbf16>
    tpu.vector_store %arg6[%c0_5, %c273], %21 {strides = array<i32>} : memref<8x290xbf16, #tpu.memory_space<vmem>>, vector<8x17xbf16>,
    %cst_6 = arith.constant 1.000000e+00 : bf16
    %24 = vector.broadcast %cst_6 : bf16 to vector<1x256xbf16>
    %c0_7 = arith.constant 0 : index
    %c0_8 = arith.constant 0 : index
    %c0_9 = arith.constant 0 : index
    %25 = vector.load %arg1[%c0_7, %c0_8, %c0_9] : memref<1x4x256xf32, #tpu.memory_space<vmem>>, vector<1x4x256xf32>
    %26 = vector.shape_cast %25 : vector<1x4x256xf32> to vector<4x256xf32>
    %27 = arith.truncf %26 : vector<4x256xf32> to vector<4x256xbf16>
    %c0_10 = arith.constant 0 : index
    %c17 = arith.constant 17 : index
    %28 = vector.load %arg6[%c0_10, %c17] : memref<8x290xbf16, #tpu.memory_space<vmem>>, vector<4x256xbf16>
    tpu.vector_store %arg6[%c0_10, %c17], %27 {strides = array<i32>} : memref<8x290xbf16, #tpu.memory_space<vmem>>, vector<4x256xbf16>,
    %c0_11 = arith.constant 0 : index
    %c0_12 = arith.constant 0 : index
    %29 = vector.load %arg6[%c0_11, %c0_12] : memref<8x290xbf16, #tpu.memory_space<vmem>>, vector<4x256xbf16>
    %cst_13 = arith.constant 0.000000e+00 : bf16
    %30 = vector.broadcast %cst_13 : bf16 to vector<4x256xbf16>
    %31 = vector.shape_cast %18 : vector<1x256xi1> to vector<1x256xi1>
    %32 = vector.broadcast %31 : vector<1x256xi1> to vector<4x256xi1>
    %33 = arith.select %32, %29, %30 : vector<4x256xi1>, vector<4x256xbf16>
    %c0_14 = arith.constant 0 : index
    %c0_15 = arith.constant 0 : index
    %34 = vector.load %arg7[%c0_14, %c0_15] : memref<73x256xbf16, #tpu.memory_space<vmem>>, vector<4x256xbf16>
    tpu.vector_store %arg7[%c0_14, %c0_15], %33 {strides = array<i32>} : memref<73x256xbf16, #tpu.memory_space<vmem>>, vector<4x256xbf16>,
    %c0_16 = arith.constant 0 : index
    %c1 = arith.constant 1 : index
    %35 = vector.load %arg6[%c0_16, %c1] : memref<8x290xbf16, #tpu.memory_space<vmem>>, vector<4x256xbf16>
    %c4 = arith.constant 4 : index
    %c0_17 = arith.constant 0 : index
    %36 = vector.load %arg7[%c4, %c0_17] : memref<73x256xbf16, #tpu.memory_space<vmem>>, vector<4x256xbf16>
    tpu.vector_store %arg7[%c4, %c0_17], %35 {strides = array<i32>} : memref<73x256xbf16, #tpu.memory_space<vmem>>, vector<4x256xbf16>,
    %c0_18 = arith.constant 0 : index
    %c2 = arith.constant 2 : index
    %37 = vector.load %arg6[%c0_18, %c2] : memref<8x290xbf16, #tpu.memory_space<vmem>>, vector<4x256xbf16>
    %cst_19 = arith.constant 0.000000e+00 : bf16
    %38 = vector.broadcast %cst_19 : bf16 to vector<4x256xbf16>
    %39 = vector.shape_cast %20 : vector<1x256xi1> to vector<1x256xi1>
    %40 = vector.broadcast %39 : vector<1x256xi1> to vector<4x256xi1>
    %41 = arith.select %40, %37, %38 : vector<4x256xi1>, vector<4x256xbf16>
    %c8 = arith.constant 8 : index
    %c0_20 = arith.constant 0 : index
    %42 = vector.load %arg7[%c8, %c0_20] : memref<73x256xbf16, #tpu.memory_space<vmem>>, vector<4x256xbf16>
    tpu.vector_store %arg7[%c8, %c0_20], %41 {strides = array<i32>} : memref<73x256xbf16, #tpu.memory_space<vmem>>, vector<4x256xbf16>,
    %c0_21 = arith.constant 0 : index
    %c16 = arith.constant 16 : index
    %43 = vector.load %arg6[%c0_21, %c16] : memref<8x290xbf16, #tpu.memory_space<vmem>>, vector<4x256xbf16>
    %cst_22 = arith.constant 0.000000e+00 : bf16
    %44 = vector.broadcast %cst_22 : bf16 to vector<4x256xbf16>
    %45 = vector.shape_cast %18 : vector<1x256xi1> to vector<1x256xi1>
    %46 = vector.broadcast %45 : vector<1x256xi1> to vector<4x256xi1>
    %47 = arith.select %46, %43, %44 : vector<4x256xi1>, vector<4x256xbf16>
    %c12 = arith.constant 12 : index
    %c0_23 = arith.constant 0 : index
    %48 = vector.load %arg7[%c12, %c0_23] : memref<73x256xbf16, #tpu.memory_space<vmem>>, vector<4x256xbf16>
    tpu.vector_store %arg7[%c12, %c0_23], %47 {strides = array<i32>} : memref<73x256xbf16, #tpu.memory_space<vmem>>, vector<4x256xbf16>,
    %c0_24 = arith.constant 0 : index
    %c17_25 = arith.constant 17 : index
    %49 = vector.load %arg6[%c0_24, %c17_25] : memref<8x290xbf16, #tpu.memory_space<vmem>>, vector<4x256xbf16>
    %c16_26 = arith.constant 16 : index
    %c0_27 = arith.constant 0 : index
    %50 = vector.load %arg7[%c16_26, %c0_27] : memref<73x256xbf16, #tpu.memory_space<vmem>>, vector<4x256xbf16>
    tpu.vector_store %arg7[%c16_26, %c0_27], %49 {strides = array<i32>} : memref<73x256xbf16, #tpu.memory_space<vmem>>, vector<4x256xbf16>,
    %c0_28 = arith.constant 0 : index
    %c18 = arith.constant 18 : index
    %51 = vector.load %arg6[%c0_28, %c18] : memref<8x290xbf16, #tpu.memory_space<vmem>>, vector<4x256xbf16>
    %cst_29 = arith.constant 0.000000e+00 : bf16
    %52 = vector.broadcast %cst_29 : bf16 to vector<4x256xbf16>
    %53 = vector.shape_cast %20 : vector<1x256xi1> to vector<1x256xi1>
    %54 = vector.broadcast %53 : vector<1x256xi1> to vector<4x256xi1>
    %55 = arith.select %54, %51, %52 : vector<4x256xi1>, vector<4x256xbf16>
    %c20 = arith.constant 20 : index
    %c0_30 = arith.constant 0 : index
    %56 = vector.load %arg7[%c20, %c0_30] : memref<73x256xbf16, #tpu.memory_space<vmem>>, vector<4x256xbf16>
    tpu.vector_store %arg7[%c20, %c0_30], %55 {strides = array<i32>} : memref<73x256xbf16, #tpu.memory_space<vmem>>, vector<4x256xbf16>,
    %c0_31 = arith.constant 0 : index
    %c32 = arith.constant 32 : index
    %57 = vector.load %arg6[%c0_31, %c32] : memref<8x290xbf16, #tpu.memory_space<vmem>>, vector<4x256xbf16>
    %cst_32 = arith.constant 0.000000e+00 : bf16
    %58 = vector.broadcast %cst_32 : bf16 to vector<4x256xbf16>
    %59 = vector.shape_cast %18 : vector<1x256xi1> to vector<1x256xi1>
    %60 = vector.broadcast %59 : vector<1x256xi1> to vector<4x256xi1>
    %61 = arith.select %60, %57, %58 : vector<4x256xi1>, vector<4x256xbf16>
    %c24 = arith.constant 24 : index
    %c0_33 = arith.constant 0 : index
    %62 = vector.load %arg7[%c24, %c0_33] : memref<73x256xbf16, #tpu.memory_space<vmem>>, vector<4x256xbf16>
    tpu.vector_store %arg7[%c24, %c0_33], %61 {strides = array<i32>} : memref<73x256xbf16, #tpu.memory_space<vmem>>, vector<4x256xbf16>,
    %c0_34 = arith.constant 0 : index
    %c33 = arith.constant 33 : index
    %63 = vector.load %arg6[%c0_34, %c33] : memref<8x290xbf16, #tpu.memory_space<vmem>>, vector<4x256xbf16>
    %c28 = arith.constant 28 : index
    %c0_35 = arith.constant 0 : index
    %64 = vector.load %arg7[%c28, %c0_35] : memref<73x256xbf16, #tpu.memory_space<vmem>>, vector<4x256xbf16>
    tpu.vector_store %arg7[%c28, %c0_35], %63 {strides = array<i32>} : memref<73x256xbf16, #tpu.memory_space<vmem>>, vector<4x256xbf16>,
    %c0_36 = arith.constant 0 : index
    %c34 = arith.constant 34 : index
    %65 = vector.load %arg6[%c0_36, %c34] : memref<8x290xbf16, #tpu.memory_space<vmem>>, vector<4x256xbf16>
    %cst_37 = arith.constant 0.000000e+00 : bf16
    %66 = vector.broadcast %cst_37 : bf16 to vector<4x256xbf16>
    %67 = vector.shape_cast %20 : vector<1x256xi1> to vector<1x256xi1>
    %68 = vector.broadcast %67 : vector<1x256xi1> to vector<4x256xi1>
    %69 = arith.select %68, %65, %66 : vector<4x256xi1>, vector<4x256xbf16>
    %c32_38 = arith.constant 32 : index
    %c0_39 = arith.constant 0 : index
    %70 = vector.load %arg7[%c32_38, %c0_39] : memref<73x256xbf16, #tpu.memory_space<vmem>>, vector<4x256xbf16>
    tpu.vector_store %arg7[%c32_38, %c0_39], %69 {strides = array<i32>} : memref<73x256xbf16, #tpu.memory_space<vmem>>, vector<4x256xbf16>,
    %c36 = arith.constant 36 : index
    %c0_40 = arith.constant 0 : index
    %71 = vector.load %arg7[%c36, %c0_40] : memref<73x256xbf16, #tpu.memory_space<vmem>>, vector<1x256xbf16>
    tpu.vector_store %arg7[%c36, %c0_40], %24 {strides = array<i32>} : memref<73x256xbf16, #tpu.memory_space<vmem>>, vector<1x256xbf16>,
    %c0_41 = arith.constant 0 : index
    %c0_42 = arith.constant 0 : index
    %72 = vector.load %arg7[%c0_41, %c0_42] : memref<73x256xbf16, #tpu.memory_space<vmem>>, vector<37x256xbf16>
    %c0_43 = arith.constant 0 : index
    %c0_44 = arith.constant 0 : index
    %73 = vector.load %arg4[%c0_43, %c0_44] : memref<8x37xbf16, #tpu.memory_space<vmem>>, vector<8x37xbf16>
    %cst_45 = arith.constant dense<0.000000e+00> : vector<8x256xf32>
    %74 = tpu.matmul %73, %72, %cst_45 {dimension_numbers = #tpu.dot_dimension_numbers<[1], [0], [0], [1], [0, 0, 1, 1], [], []>} : vector<8x37xbf16>, vector<37x256xbf16>, vector<8x256xf32> -> vector<8x256xf32>
    %c0_46 = arith.constant 0 : index
    %c0_47 = arith.constant 0 : index
    %c0_48 = arith.constant 0 : index
    %75 = vector.load %arg5[%c0_46, %c0_47, %c0_48] : memref<1x8x256xf32, #tpu.memory_space<vmem>>, vector<1x8x256xf32>
    %76 = vector.shape_cast %75 : vector<1x8x256xf32> to vector<8x256xf32>
    %77 = vector.shape_cast %74 : vector<8x256xf32> to vector<1x8x256xf32>
    tpu.vector_store %arg5[%c0_46, %c0_47, %c0_48], %77 {strides = array<i32>} : memref<1x8x256xf32, #tpu.memory_space<vmem>>, vector<1x8x256xf32>,
    %cst_49 = arith.constant 0.000000e+00 : bf16
    %78 = vector.broadcast %cst_49 : bf16 to vector<37x256xbf16>
    %79 = arith.maximumf %72, %78 : vector<37x256xbf16>
    %c0_50 = arith.constant 0 : index
    %c0_51 = arith.constant 0 : index
    %80 = vector.load %arg2[%c0_50, %c0_51] : memref<8x37xbf16, #tpu.memory_space<vmem>>, vector<8x37xbf16>
    %cst_52 = arith.constant dense<0.000000e+00> : vector<8x256xf32>
    %81 = tpu.matmul %80, %79, %cst_52 {dimension_numbers = #tpu.dot_dimension_numbers<[1], [0], [0], [1], [0, 0, 1, 1], [], []>} : vector<8x37xbf16>, vector<37x256xbf16>, vector<8x256xf32> -> vector<8x256xf32>
    %cst_53 = arith.constant 0.000000e+00 : f32
    %82 = vector.broadcast %cst_53 : f32 to vector<8x256xf32>
    %83 = arith.maximumf %81, %82 : vector<8x256xf32>
    %84 = arith.truncf %83 : vector<8x256xf32> to vector<8x256xbf16>
    %c0_54 = arith.constant 0 : index
    %c17_55 = arith.constant 17 : index
    %85 = vector.load %arg6[%c0_54, %c17_55] : memref<8x290xbf16, #tpu.memory_space<vmem>>, vector<8x256xbf16>
    tpu.vector_store %arg6[%c0_54, %c17_55], %84 {strides = array<i32>} : memref<8x290xbf16, #tpu.memory_space<vmem>>, vector<8x256xbf16>,
    %c0_56 = arith.constant 0 : index
    %c0_57 = arith.constant 0 : index
    %86 = vector.load %arg6[%c0_56, %c0_57] : memref<8x290xbf16, #tpu.memory_space<vmem>>, vector<8x256xbf16>
    %cst_58 = arith.constant 0.000000e+00 : bf16
    %87 = vector.broadcast %cst_58 : bf16 to vector<8x256xbf16>
    %88 = vector.shape_cast %18 : vector<1x256xi1> to vector<1x256xi1>
    %89 = vector.broadcast %88 : vector<1x256xi1> to vector<8x256xi1>
    %90 = arith.select %89, %86, %87 : vector<8x256xi1>, vector<8x256xbf16>
    %c0_59 = arith.constant 0 : index
    %c0_60 = arith.constant 0 : index
    %91 = vector.load %arg7[%c0_59, %c0_60] : memref<73x256xbf16, #tpu.memory_space<vmem>>, vector<8x256xbf16>
    tpu.vector_store %arg7[%c0_59, %c0_60], %90 {strides = array<i32>} : memref<73x256xbf16, #tpu.memory_space<vmem>>, vector<8x256xbf16>,
    %c0_61 = arith.constant 0 : index
    %c1_62 = arith.constant 1 : index
    %92 = vector.load %arg6[%c0_61, %c1_62] : memref<8x290xbf16, #tpu.memory_space<vmem>>, vector<8x256xbf16>
    %c8_63 = arith.constant 8 : index
    %c0_64 = arith.constant 0 : index
    %93 = vector.load %arg7[%c8_63, %c0_64] : memref<73x256xbf16, #tpu.memory_space<vmem>>, vector<8x256xbf16>
    tpu.vector_store %arg7[%c8_63, %c0_64], %92 {strides = array<i32>} : memref<73x256xbf16, #tpu.memory_space<vmem>>, vector<8x256xbf16>,
    %c0_65 = arith.constant 0 : index
    %c2_66 = arith.constant 2 : index
    %94 = vector.load %arg6[%c0_65, %c2_66] : memref<8x290xbf16, #tpu.memory_space<vmem>>, vector<8x256xbf16>
    %cst_67 = arith.constant 0.000000e+00 : bf16
    %95 = vector.broadcast %cst_67 : bf16 to vector<8x256xbf16>
    %96 = vector.shape_cast %20 : vector<1x256xi1> to vector<1x256xi1>
    %97 = vector.broadcast %96 : vector<1x256xi1> to vector<8x256xi1>
    %98 = arith.select %97, %94, %95 : vector<8x256xi1>, vector<8x256xbf16>
    %c16_68 = arith.constant 16 : index
    %c0_69 = arith.constant 0 : index
    %99 = vector.load %arg7[%c16_68, %c0_69] : memref<73x256xbf16, #tpu.memory_space<vmem>>, vector<8x256xbf16>
    tpu.vector_store %arg7[%c16_68, %c0_69], %98 {strides = array<i32>} : memref<73x256xbf16, #tpu.memory_space<vmem>>, vector<8x256xbf16>,
    %c0_70 = arith.constant 0 : index
    %c16_71 = arith.constant 16 : index
    %100 = vector.load %arg6[%c0_70, %c16_71] : memref<8x290xbf16, #tpu.memory_space<vmem>>, vector<8x256xbf16>
    %cst_72 = arith.constant 0.000000e+00 : bf16
    %101 = vector.broadcast %cst_72 : bf16 to vector<8x256xbf16>
    %102 = vector.shape_cast %18 : vector<1x256xi1> to vector<1x256xi1>
    %103 = vector.broadcast %102 : vector<1x256xi1> to vector<8x256xi1>
    %104 = arith.select %103, %100, %101 : vector<8x256xi1>, vector<8x256xbf16>
    %c24_73 = arith.constant 24 : index
    %c0_74 = arith.constant 0 : index
    %105 = vector.load %arg7[%c24_73, %c0_74] : memref<73x256xbf16, #tpu.memory_space<vmem>>, vector<8x256xbf16>
    tpu.vector_store %arg7[%c24_73, %c0_74], %104 {strides = array<i32>} : memref<73x256xbf16, #tpu.memory_space<vmem>>, vector<8x256xbf16>,
    %c0_75 = arith.constant 0 : index
    %c17_76 = arith.constant 17 : index
    %106 = vector.load %arg6[%c0_75, %c17_76] : memref<8x290xbf16, #tpu.memory_space<vmem>>, vector<8x256xbf16>
    %c32_77 = arith.constant 32 : index
    %c0_78 = arith.constant 0 : index
    %107 = vector.load %arg7[%c32_77, %c0_78] : memref<73x256xbf16, #tpu.memory_space<vmem>>, vector<8x256xbf16>
    tpu.vector_store %arg7[%c32_77, %c0_78], %106 {strides = array<i32>} : memref<73x256xbf16, #tpu.memory_space<vmem>>, vector<8x256xbf16>,
    %c0_79 = arith.constant 0 : index
    %c18_80 = arith.constant 18 : index
    %108 = vector.load %arg6[%c0_79, %c18_80] : memref<8x290xbf16, #tpu.memory_space<vmem>>, vector<8x256xbf16>
    %cst_81 = arith.constant 0.000000e+00 : bf16
    %109 = vector.broadcast %cst_81 : bf16 to vector<8x256xbf16>
    %110 = vector.shape_cast %20 : vector<1x256xi1> to vector<1x256xi1>
    %111 = vector.broadcast %110 : vector<1x256xi1> to vector<8x256xi1>
    %112 = arith.select %111, %108, %109 : vector<8x256xi1>, vector<8x256xbf16>
    %c40 = arith.constant 40 : index
    %c0_82 = arith.constant 0 : index
    %113 = vector.load %arg7[%c40, %c0_82] : memref<73x256xbf16, #tpu.memory_space<vmem>>, vector<8x256xbf16>
    tpu.vector_store %arg7[%c40, %c0_82], %112 {strides = array<i32>} : memref<73x256xbf16, #tpu.memory_space<vmem>>, vector<8x256xbf16>,
    %c0_83 = arith.constant 0 : index
    %c32_84 = arith.constant 32 : index
    %114 = vector.load %arg6[%c0_83, %c32_84] : memref<8x290xbf16, #tpu.memory_space<vmem>>, vector<8x256xbf16>
    %cst_85 = arith.constant 0.000000e+00 : bf16
    %115 = vector.broadcast %cst_85 : bf16 to vector<8x256xbf16>
    %116 = vector.shape_cast %18 : vector<1x256xi1> to vector<1x256xi1>
    %117 = vector.broadcast %116 : vector<1x256xi1> to vector<8x256xi1>
    %118 = arith.select %117, %114, %115 : vector<8x256xi1>, vector<8x256xbf16>
    %c48 = arith.constant 48 : index
    %c0_86 = arith.constant 0 : index
    %119 = vector.load %arg7[%c48, %c0_86] : memref<73x256xbf16, #tpu.memory_space<vmem>>, vector<8x256xbf16>
    tpu.vector_store %arg7[%c48, %c0_86], %118 {strides = array<i32>} : memref<73x256xbf16, #tpu.memory_space<vmem>>, vector<8x256xbf16>,
    %c0_87 = arith.constant 0 : index
    %c33_88 = arith.constant 33 : index
    %120 = vector.load %arg6[%c0_87, %c33_88] : memref<8x290xbf16, #tpu.memory_space<vmem>>, vector<8x256xbf16>
    %c56 = arith.constant 56 : index
    %c0_89 = arith.constant 0 : index
    %121 = vector.load %arg7[%c56, %c0_89] : memref<73x256xbf16, #tpu.memory_space<vmem>>, vector<8x256xbf16>
    tpu.vector_store %arg7[%c56, %c0_89], %120 {strides = array<i32>} : memref<73x256xbf16, #tpu.memory_space<vmem>>, vector<8x256xbf16>,
    %c0_90 = arith.constant 0 : index
    %c34_91 = arith.constant 34 : index
    %122 = vector.load %arg6[%c0_90, %c34_91] : memref<8x290xbf16, #tpu.memory_space<vmem>>, vector<8x256xbf16>
    %cst_92 = arith.constant 0.000000e+00 : bf16
    %123 = vector.broadcast %cst_92 : bf16 to vector<8x256xbf16>
    %124 = vector.shape_cast %20 : vector<1x256xi1> to vector<1x256xi1>
    %125 = vector.broadcast %124 : vector<1x256xi1> to vector<8x256xi1>
    %126 = arith.select %125, %122, %123 : vector<8x256xi1>, vector<8x256xbf16>
    %c64 = arith.constant 64 : index
    %c0_93 = arith.constant 0 : index
    %127 = vector.load %arg7[%c64, %c0_93] : memref<73x256xbf16, #tpu.memory_space<vmem>>, vector<8x256xbf16>
    tpu.vector_store %arg7[%c64, %c0_93], %126 {strides = array<i32>} : memref<73x256xbf16, #tpu.memory_space<vmem>>, vector<8x256xbf16>,
    %c72 = arith.constant 72 : index
    %c0_94 = arith.constant 0 : index
    %128 = vector.load %arg7[%c72, %c0_94] : memref<73x256xbf16, #tpu.memory_space<vmem>>, vector<1x256xbf16>
    tpu.vector_store %arg7[%c72, %c0_94], %24 {strides = array<i32>} : memref<73x256xbf16, #tpu.memory_space<vmem>>, vector<1x256xbf16>,
    %c0_95 = arith.constant 0 : index
    %c0_96 = arith.constant 0 : index
    %129 = vector.load %arg7[%c0_95, %c0_96] : memref<73x256xbf16, #tpu.memory_space<vmem>>, vector<73x256xbf16>
    %c0_97 = arith.constant 0 : index
    %c0_98 = arith.constant 0 : index
    %130 = vector.load %arg3[%c0_97, %c0_98] : memref<8x73xbf16, #tpu.memory_space<vmem>>, vector<8x73xbf16>
    %cst_99 = arith.constant dense<0.000000e+00> : vector<8x256xf32>
    %131 = tpu.matmul %130, %129, %cst_99 {dimension_numbers = #tpu.dot_dimension_numbers<[1], [0], [0], [1], [0, 0, 1, 1], [], []>} : vector<8x73xbf16>, vector<73x256xbf16>, vector<8x256xf32> -> vector<8x256xf32>
    %c0_100 = arith.constant 0 : index
    %c0_101 = arith.constant 0 : index
    %c0_102 = arith.constant 0 : index
    %132 = vector.load %arg5[%c0_100, %c0_101, %c0_102] : memref<1x8x256xf32, #tpu.memory_space<vmem>>, vector<1x8x256xf32>
    %133 = vector.shape_cast %132 : vector<1x8x256xf32> to vector<8x256xf32>
    %134 = arith.addf %133, %131 : vector<8x256xf32>
    %c0_103 = arith.constant 0 : index
    %c0_104 = arith.constant 0 : index
    %c0_105 = arith.constant 0 : index
    %135 = vector.load %arg5[%c0_103, %c0_104, %c0_105] : memref<1x8x256xf32, #tpu.memory_space<vmem>>, vector<1x8x256xf32>
    %136 = vector.shape_cast %135 : vector<1x8x256xf32> to vector<8x256xf32>
    %137 = vector.shape_cast %134 : vector<8x256xf32> to vector<1x8x256xf32>
    tpu.vector_store %arg5[%c0_103, %c0_104, %c0_105], %137 {strides = array<i32>} : memref<1x8x256xf32, #tpu.memory_space<vmem>>, vector<1x8x256xf32>,
    return
  }
  func.func @transform_0(%arg0: i32) -> (i32, i32, i32) {
    %c0_i32 = arith.constant 0 : i32
    %c0_i32_0 = arith.constant 0 : i32
    %c0_i32_1 = arith.constant 0 : i32
    return %arg0, %c0_i32, %c0_i32_0 : i32, i32, i32
  }
  func.func @transform_1(%arg0: i32) -> (i32, i32) {
    %c0_i32 = arith.constant 0 : i32
    %c0_i32_0 = arith.constant 0 : i32
    %c0_i32_1 = arith.constant 0 : i32
    return %c0_i32, %c0_i32_0 : i32, i32
  }
  func.func @transform_2(%arg0: i32) -> (i32, i32) {
    %c0_i32 = arith.constant 0 : i32
    %c0_i32_0 = arith.constant 0 : i32
    %c0_i32_1 = arith.constant 0 : i32
    return %c0_i32, %c0_i32_0 : i32, i32
  }
  func.func @transform_3(%arg0: i32) -> (i32, i32) {
    %c0_i32 = arith.constant 0 : i32
    %c0_i32_0 = arith.constant 0 : i32
    %c0_i32_1 = arith.constant 0 : i32
    return %c0_i32, %c0_i32_0 : i32, i32
  }
  func.func @transform_4(%arg0: i32) -> (i32, i32, i32) {
    %c0_i32 = arith.constant 0 : i32
    %c0_i32_0 = arith.constant 0 : i32
    %c0_i32_1 = arith.constant 0 : i32
    return %arg0, %c0_i32, %c0_i32_0 : i32, i32, i32
  }
}

</mosaic_0001>

<bundles_post_ra>
// kernel: tpu_custom_call.1
= control target key start
LH: loop header
LB: loop body
LE: loop exit
PB: predicated region body
PF: predicated region fallthrough
CT: control target
= control target key end

     0   :  { %9 = vsyncpa [#allocation5], 0  ;;  %s1757_s0 = inlined_call_operand.hbm [shape: f32[2,4,256], index: 0, kind: input, shape index: {}]   ;;  %s1758_s1 = inlined_call_operand.hbm [shape: bf16[8,37], index: 1, kind: input, shape index: {}]   ;;  %s1759_s2 = inlined_call_operand.hbm [shape: bf16[8,73], index: 2, kind: input, shape index: {}]   ;;  %s1760_s3 = inlined_call_operand.vmem [shape: bf16[8,37], index: 3, kind: input, shape index: {}]   ;;  %s1761_s4 = inlined_call_operand.hbm [shape: f32[2,8,256], index: 4, kind: output, shape index: {}]  }
   0x1   :  { %11 = vsyncpa [#allocation5 + $0x1], 0 }
   0x2   :  { %12 = vsyncpa [#allocation8], 0 }
   0x3   :  { %13 = vsyncpa [#allocation6], 0 }
   0x4   :  { %15 = vsyncpa [#allocation6 + $0x1], 0  ;;  %s1383_s15 = smov 0   ;;  %s1385_s16 = smov 0  }
   0x5   :  { %s1387_s17 = smov 0   ;;  %s1389_s18 = smov 0  }
   0x6 LB: > { %s1404_s19 = sadd.s32 4294967295, %s1336_s18   ;;  %s1049_s20 = sadd.s32 4294967294, %s1336_s18   ;;  %s1336_s18 = sphi %s1389_s18, %s1837_s18   ;;  %s1332_s17 = sphi %s1387_s17, %s1836_s17   ;;  %s1328_s16 = sphi %s1385_s16, %s1835_s16   ;;  %s1324_s15 = sphi %s1383_s15, %s1834_s15  }
   0x7   : > { %p41_p0 = scmp.ne.s32.totalorder %s1328_s16, %s1324_s15  ;;  %p1762_p1 = scmp.eq.s32.totalorder %s1404_s19, 0 }
   0x8   : > { %p134_p3 = scmp.eq.s32.totalorder %s1049_s20, 1  ;;  %p1050_p5 = scmp.ge.s32.totalorder %s1336_s18, 1 }
   0x9   : > { %p1413_p4 = por %p1762_p1, %p41_p0  ;;  %p141_p7 = scmp.lt.s32.totalorder %s1336_s18, 3 }
   0xa   : > { %p1418_p6 = por %p134_p3, %p41_p0  ;;  %s1338_s24 = smov [#allocation7]  }
   0xb   : > { %s1782_s21 = scalar_select %p1413_p4, 1, 0 }
   0xc   : > { %s1783_s22 = scalar_select %p1418_p6, 1, 0 }
   0xd   : > { %p1423_p8 = pnand %p1050_p5, %p141_p7  ;;  %s154_s25 = sshll.u32 %s1338_s24, 4  ;;  %s155_s25 = int_to_ptr.vmem [resolvable:$true] %s154_s25 }
   0xe   : > { %s1339_s26 = smov [#allocation9]   ;;  %s1437_s29 = sadd.s32 1, %s1336_s18  }
   0xf   : > { %s1784_s23 = scalar_select %p1423_p8, 1, 0 }
  0x10   : > { %p1110_p10 = pneg %p1423_p8  ;;  %s165_s27 = sshll.u32 %s1339_s26, 4  ;;  %s166_s27 = int_to_ptr.vmem [resolvable:$true] %s165_s27 }
  0x11   : > { %s25_s30 = ssub.s32 %s1336_s18, %s1437_s29  ;;  %s1199_s5 = scalar_lea.vmem %s155_s25, 64 }
  0x12   : > { %p1432_p11 = pnand %p1110_p10, %p1762_p1  ;;  %p1200_p13 = scmp.ne.s32.totalorder %s155_s25, %s1199_s5 }
  0x13   : > { %p1207_p5 = scmp.lt.s32.totalorder %s155_s25, %s155_s25  ;;  %p1208_p7 = scmp.lt.s32.totalorder %s1199_s5, %s1199_s5 }
  0x14   : > { %p1190_p12 = pneg %p1432_p11 }
  0x15   : > { %p1209_p10 = por %p1208_p7, %p1207_p5 }
  0x16   : > { %p1202_p0 = pnand %p1200_p13, %p1190_p12 }
  0x18   : > { %p1203_p3 = pneg %p1202_p0 }
  0x1a   : > { %p1210_p9 = pnand %p1209_p10, %p1203_p3 }
  0x1c   : > { %1213 = shalt.err (!%p1210_p9)
}
  0x1d   : > { %1113 = dma.hbm_to_vmem [thread:$0]  (!%p1432_p11), %s1758_s1, 64, %s155_s25, [#allocation8]  }
  0x1e   : > { %s1225_s8 = scalar_lea.vmem %s166_s27, 64  ;;  %p1233_p13 = scmp.lt.s32.totalorder %s166_s27, %s166_s27 }
  0x1f   : > { %p1226_p1 = scmp.ne.s32.totalorder %s166_s27, %s1225_s8  ;;  %p1234_p0 = scmp.lt.s32.totalorder %s1225_s8, %s1225_s8 }
  0x21   : > { %p1228_p2 = pnand %p1226_p1, %p1190_p12  ;;  %p1235_p4 = por %p1234_p0, %p1233_p13 }
  0x23   : > { %p1229_p6 = pneg %p1228_p2 }
  0x25   : > { %p1236_p8 = pnand %p1235_p4, %p1229_p6 }
  0x27   : > { %1239 = shalt.err (!%p1236_p8)
}
  0x28   : > { %1116 = dma.hbm_to_vmem [thread:$0]  (!%p1432_p11), %s1759_s2, 64, %s166_s27, [#allocation8]  }
  0x29   : > { %p26_p1 = scmp.eq.s32.totalorder %s25_s30, 0  ;;  %s28_s11 = sadd.s32 1, %s1332_s17 }
  0x2a   : > { %p35_p2 = scmp.ne.s32.totalorder %s1332_s17, %s1328_s16  ;;  %p36_p4 = scmp.eq.s32.totalorder %s1336_s18, 0 }
  0x2b   : > { %s1464_s12 = scalar_select %p26_p1, %s1332_s17, %s28_s11  }
  0x2c   : > { %p37_p6 = por %p36_p4, %p35_p2  ;;  %p1786_p8 = scmp.eq.s32.totalorder %s1404_s19, 1 }
  0x2d   : > { %p1127_p12 = scmp.lt.s32.totalorder %s1336_s18, 2  ;;  %s179_s14 = sand.u32 1, %s1332_s17  }
  0x2e   : > { %p1468_p9 = por %p1786_p8, %p35_p2  ;;  %s1054_s20 = sshll.u32 %s179_s14, 3 }
  0x2f   : > { %s1094_s24 = sshll.u32 %s1336_s18, 7  ;;  %s183_s28 = scalar_lea.vmem [#allocation4], %s1054_s20 }
  0x30   : > { %s1787_s13 = scalar_select %p1468_p9, 1, 0 }
  0x31   : > { %s1478_s27 = scalar_lea.hbm %s1757_s0, %s1094_s24  ;;  %s191_s30 = sshll.u32 %s183_s28, 4  ;;  %s192_s30 = int_to_ptr.vmem [resolvable:$true] %s191_s30 }
  0x32   : > { %p1480_p11 = pnand %p1127_p12, %p37_p6  ;;  %s180_s6 = scalar_lea.sflag [#allocation5], %s179_s14 }
  0x33   : > { %s1240_s7 = scalar_lea.hbm %s1478_s27, 128  ;;  %s1245_s10 = scalar_lea.hbm %s1757_s0, 256 }
  0x34   : > { %p1241_p3 = scmp.ne.s32.totalorder %s1478_s27, %s1240_s7  ;;  %p1242_p5 = pneg %p1480_p11 }
  0x35   : > { %p1246_p13 = scmp.lt.s32.totalorder %s1478_s27, %s1757_s0  ;;  %p1247_p0 = scmp.lt.s32.totalorder %s1245_s10, %s1240_s7 }
  0x36   : > { %p1243_p7 = pnand %p1242_p5, %p1241_p3 }
  0x37   : > { %p1248_p1 = por %p1247_p0, %p1246_p13 }
  0x38   : > { %p1244_p10 = pneg %p1243_p7 }
  0x3a   : > { %p1249_p2 = pnand %p1248_p1, %p1244_p10 }
  0x3c   : > { %1252 = shalt.err (!%p1249_p2)
}
  0x3d   : > { %s1253_s24 = scalar_lea.vmem %s192_s30, 128  ;;  %s1340_s14 = smov [#allocation4]  }
  0x3e   : > { %p1254_p4 = scmp.ne.s32.totalorder %s192_s30, %s1253_s24  ;;  %s1258_s25 = sshll.u32 %s1340_s14, 4  ;;  %s1259_s25 = int_to_ptr.vmem [resolvable:$false] %s1258_s25 }
  0x3f   : > { %s1260_s26 = scalar_lea.vmem %s1259_s25, 256  ;;  %p1261_p12 = scmp.lt.s32.totalorder %s192_s30, %s1259_s25 }
  0x40   : > { %p1256_p6 = pnand %p1254_p4, %p1242_p5  ;;  %p1262_p3 = scmp.lt.s32.totalorder %s1260_s26, %s1253_s24 }
  0x42   : > { %p1257_p8 = pneg %p1256_p6  ;;  %p1263_p7 = por %p1262_p3, %p1261_p12 }
  0x44   : > { %p1264_p9 = pnand %p1263_p7, %p1257_p8 }
  0x46   : > { %1267 = shalt.err (!%p1264_p9)
}
  0x47   : > { %1120 = dma.hbm_to_vmem [thread:$0]  (!%p1480_p11), %s1478_s27, 128, %s192_s30, %s180_s6  }
  0x48   : > { %p1789_p10 = scmp.ne.s32.totalorder %s1784_s23, 0 }
  0x49   : > { %s1501_s28 = sand.u32 (!%p1789_p10), 1, %s1328_s16   ;;  %p1790_p5 = scmp.ne.s32.totalorder (!%p1789_p10), %s1782_s21, 0 }
  0x4a   : > { %200 = sbr.rel (%p1789_p10) target bundleno = 1077 (0x435), region = 36  ;;  %s1058_s7 = sshll.u32 (!%p1789_p10), %s1501_s28, 3 }
  0x4b   : > { %s203_s8 = scalar_lea.sflag (!%p1789_p10), [#allocation5], %s1501_s28  ;;  %s206_s9 = scalar_lea.vmem (!%p1789_p10), [#allocation4], %s1058_s7 }
  0x4f   : > { %1311 = dma.done.wait (%p1790_p5), %s203_s8, 128  }
  0x50   : > { %1313 = vsyncadd (%p1790_p5), %s203_s8, 4294967168  ;;  %p1791_p9 = scmp.eq.s32.totalorder %s1404_s19, 0 }
  0x52   : > { %1315 = dma.done.wait (%p1791_p9), [#allocation8], 128   ;;  %p1792_p11 = pmov %p1791_p9 }
  0x53   : > { %v243_v0 = vlaneseq  ;;  %vm274_vm0 = vcmask 134144   ;;  %vm276_vm1 = vcmask 273544   ;;  %v1341_v1 = vmov 0   ;;  %v278_v6 = vld [vmem:[%s206_s9] sm:$0xff]  ;;  %s1342_s21 = smov 18   ;;  %s1343_s23 = smov 17  }
  0x54   : > { %1317 = vsyncadd (%p1792_p11), [#allocation8], 4294967168  ;;  %578 = vmatprep.mubr.bf16.mxu1 %v1341_v1  ;;  %930 = vmatprep.mubr.bf16.mxu0 %v1341_v1  ;;  %275 = vst.msk [vmem:[#allocation2] sm:$0xf] %vm274_vm0, %v1341_v1  ;;  %v280_v7 = vcombine.high %v278_v6, %v278_v6  ;;  %s1344_s27 = smov 32   ;;  %s1345_s30 = smov 34  }
  0x55   : > { %v244_v2 = vand.u32 127, %v243_v0  ;;  %277 = vst.msk [vmem:[#allocation2 + $0x8] sm:$0xf] %vm276_vm1, %v1341_v1  ;;  %s1346_s5 = smov 2   ;;  %s1347_s6 = smov 16   ;;  %vm296_vm8 = vcmask 1041544  }
  0x56   : > { %v1095_v9 = vpack.c.bf16 %v280_v7, %v278_v6  ;;  %vm297_vm9 = vcmask 1045508   ;;  %vm292_vm10 = vcmask 138240   ;;  %vm300_vm11 = vcmask 132096   ;;  %s1348_s10 = smov 111   ;;  %s1349_s11 = smov 94  }
  0x57   : > { %v245_v3 = vadd.s32 128, %v244_v2  ;;  %v250_v4 = vand.u32 15, %v244_v2  ;;  %vm298_vm12 = vmor %vm297_vm9, %vm296_vm8  ;;  %vm472_vm13 = vcmask 277504   ;;  %vm431_vm14 = vcmask 261120   ;;  %s1350_s20 = smov 96   ;;  %s1351_s24 = smov 126  }
  0x58   : > { %289 = vrot.lane.b32.xlu0 %v1095_v9, %s1343_s23  ;;  %v1799_v39 = vmov 0  ;;  %vm492_vm8 = vsmask.f32 2304  ;;  %v498_v43 = vld [vmem:[#allocation3 + $0x48] sm:$0x44]  ;;  %s1352_s14 = smov 95  }
  0x59   : > { %v257_v5 = vand.u32 15, %v245_v3  ;;  %vm272_vm2 = vcmp.lt.s32.totalorder %v250_v4, 15  ;;  %vm270_vm3 = vcmp.ge.s32.totalorder %v250_v4, 1  ;;  %v1805_v63 = vmov 0  ;;  %s1353_s25 = smov 127   ;;  %s1354_s26 = smov 110  }
  0x5a   : > { %s1355_s7 = smov 112   ;;  %p1831_p0 = scmp.ne.s32.totalorder %s1787_s13, 0 }
  0x5b   : > { %vm273_vm4 = vcmp.lt.s32.totalorder %v257_v5, 15  ;;  %vm271_vm5 = vcmp.ge.s32.totalorder %v257_v5, 1 }
  0x5c   : > { %vm334_vm6 = vmpackc.low %vm273_vm4, %vm272_vm2  ;;  %vm339_vm2 = vcmask 15360  }
  0x5d   : > { %v335_v8 = vsel %vm334_vm6, 65537, %v1341_v1  ;;  %vm1519_vm7 = vmpackc.low %vm271_vm5, %vm270_vm3  ;;  %vm491_vm5 = vcmask 1042434  }
  0x5e   : > { %402 = vrot.lane.b32.xlu1 %v335_v8, %s1342_s21  ;;  %v360_v11 = vsel %vm1519_vm7, 65537, %v1341_v1  ;;  %469 = vrot.lane.b32.xlu0 %v335_v8, %s1345_s30  ;;  %s1061_s21 = sshll.u32 %s1501_s28, 4 }
  0x62   : > { %428 = vrot.lane.b32.xlu1 %v360_v11, %s1344_s27  ;;  %361 = vrot.lane.b32.xlu0 %v360_v11, %s1347_s6  ;;  %s238_s27 = scalar_lea.vmem [#allocation10], %s1061_s21 }
  0x63   : > { %s960_s30 = sshll.u32 %s238_s27, 4  ;;  %s1716_s30 = int_to_ptr.vmem [resolvable:$true] %s960_s30 }
  0x66   : > { %336 = vrot.lane.b32.xlu1 %v335_v8, %s1346_s5 }
  0xca   : > { %v290_v13 = vpop.permute.xlu0 %289 }
  0xcb   : > { %v291_v14 = vrot.slane %v290_v13, 4 }
  0xcd   : > { %v293_v15 = vsel %vm292_vm10, %v291_v14, %v290_v13  ;;  %301 = vst.msk [vmem:[#allocation2 + $0x8] sm:$0x3] %vm300_vm11, %v291_v14  ;;  %vm1567_vm11 = vmand %vm491_vm5, %vm492_vm8 }
  0xce   : > { %299 = vst.msk [vmem:[#allocation2] sm:$0x33] %vm298_vm12, %v293_v15  ;;  %vm494_vm12 = vcmask 1046534  }
  0xd0   : > { %v1527_v12 = vpop.permute.xlu1 %402  ;;  %v470_v17 = vpop.permute.xlu0 %469 }
  0xd1   : > { %v471_v18 = vrot.slane %v470_v17, 4  ;;  %v404_v44 = vrot.slane %v1527_v12, 4 }
  0xd3   : > { %v1530_v20 = vsel %vm472_vm13, %v471_v18, %v470_v17  ;;  %vm1533_vm15 = vcmp.ne.s16.totalorder %v471_v18, 0  ;;  %vm495_vm13 = vsmask.f32 6400  ;;  %vm1583_vm8 = vcmp.ne.s16.totalorder %v404_v44, 0 }
  0xd4   : > { %v429_v16 = vpop.permute.xlu1 %428  ;;  %v386_v21 = vld [vmem:[#allocation2 + $0x8] sm:$0x3]  ;;  %vm1779_vm1 = vcmp.ne.s16.totalorder %v1530_v20, 0  ;;  %v362_v47 = vpop.permute.xlu0 %361 }
  0xd5   : > { %v430_v19 = vrot.slane %v429_v16, 4  ;;  %v302_v22 = vld [vmem:[#allocation2] sm:$0x33]  ;;  %391 = vrot.lane.b32.xlu1 %v386_v21, %s1348_s10  ;;  %v468_v24 = vld [vmem:[#allocation2 + $0x8] sm:$0x3]  ;;  %v363_v53 = vrot.slane %v362_v47, 4 }
  0xd6   : > { %v308_v26 = vsel %vm1519_vm7, %v302_v22, 0  ;;  %v385_v27 = vld [vmem:[#allocation2] sm:$0x33]  ;;  %v477_v31 = vsel %vm1533_vm15, %v468_v24, 0  ;;  %v427_v32 = vld [vmem:[#allocation2 + $0x8] sm:$0x3] }
  0xd7   : > { %309 = vst [vmem:[#allocation3 + $0x30] sm:$0x33] %v308_v26  ;;  %389 = vrot.lane.b32.xlu0 %v385_v27, %s1348_s10  ;;  %v467_v28 = vld [vmem:[#allocation2] sm:$0x33]  ;;  %v1541_v29 = vsel %vm431_vm14, %v430_v19, %v429_v16  ;;  %vm1546_vm3 = vcmp.ne.s16.totalorder %v430_v19, 0  ;;  %vm496_vm14 = vmand %vm494_vm12, %vm495_vm13  ;;  %vm364_vm12 = vcmask 130048  }
  0xd8   : > { %v337_v23 = vpop.permute.xlu1 %336  ;;  %v476_v34 = vsel %vm1779_vm1, %v467_v28, 0  ;;  %vm1778_vm4 = vcmp.ne.s16.totalorder %v1541_v29, 0  ;;  %v426_v35 = vld [vmem:[#allocation2] sm:$0x33]  ;;  %v436_v37 = vsel %vm1546_vm3, %v427_v32, 0  ;;  %vm497_vm5 = vmor %vm496_vm14, %vm1567_vm11  ;;  %v1590_v61 = vsel %vm364_vm12, %v363_v53, %v362_v47 }
  0xd9   : > { %v338_v30 = vrot.slane %v337_v23, 4  ;;  %482 = vrot.lane.b32.xlu1 %v477_v31, %s1349_s11  ;;  %v329_v38 = vld [vmem:[#allocation2 + $0x8] sm:$0x3]  ;;  %v435_v40 = vsel %vm1778_vm4, %v426_v35, 0  ;;  %v328_v41 = vld [vmem:[#allocation2] sm:$0x33] }
  0xda   : > { %v451_v46 = vld [vmem:[#allocation2 + $0x8] sm:$0x3]  ;;  %v450_v49 = vld [vmem:[#allocation2] sm:$0x33]  ;;  %v499_v50 = vsel %vm497_vm5, 1065369472, %v498_v43 }
  0xdb   : > { %480 = vrot.lane.b32.xlu0 %v476_v34, %s1349_s11  ;;  %v1554_v36 = vsel %vm339_vm2, %v338_v30, %v337_v23  ;;  %vm1559_vm6 = vcmp.ne.s16.totalorder %v338_v30, 0  ;;  %vm405_vm2 = vcmask 146432   ;;  %v455_v51 = vrot.slane %v451_v46, 6  ;;  %500 = vst [vmem:[#allocation3 + $0x48] sm:$0x44] %v499_v50 }
  0xdc   : > { %v1800_v39 = vsel %vm1559_vm6, 4294967295, %v1799_v39  ;;  %vm1767_vm9 = vcmp.ne.s16.totalorder %v1554_v36, 0  ;;  %v344_v45 = vsel %vm1559_vm6, %v329_v38, 0  ;;  %v1581_v52 = vsel %vm405_vm2, %v404_v44, %v1527_v12  ;;  %v311_v54 = vld [vmem:[#allocation2 + $0x8] sm:$0x3] }
  0xdd   : > { %441 = vrot.lane.b32.xlu1 %v436_v37, %s1350_s20  ;;  %v343_v48 = vsel %vm1767_vm9, %v328_v41, 0  ;;  %v454_v56 = vrot.slane %v450_v49, 6  ;;  %v401_v57 = vld [vmem:[#allocation2 + $0x8] sm:$0x3]  ;;  %v310_v58 = vld [vmem:[#allocation2] sm:$0x33] }
  0xde   : > { %vm1769_vm11 = vcmp.ne.s16.totalorder %v1581_v52, 0  ;;  %v315_v59 = vrot.slane %v311_v54, 6  ;;  %v400_v60 = vld [vmem:[#allocation2] sm:$0x33]  ;;  %v410_v62 = vsel %vm1583_vm8, %v401_v57, 0  ;;  %vm1594_vm13 = vcmp.ne.s16.totalorder %v363_v53, 0 }
  0xdf   : > { %439 = vrot.lane.b32.xlu0 %v435_v40, %s1350_s20  ;;  %v1806_v63 = vsel %vm1594_vm13, 4294967295, %v1805_v63  ;;  %v314_v0 = vrot.slane %v310_v58, 6  ;;  %v359_v2 = vld [vmem:[#allocation2 + $0x8] sm:$0x3]  ;;  %v409_v3 = vsel %vm1769_vm11, %v400_v60, 0  ;;  %vm1766_vm14 = vcmp.ne.s16.totalorder %v1590_v61, 0 }
  0xe0   : > { %v358_v4 = vld [vmem:[#allocation2] sm:$0x33]  ;;  %v414_v5 = vrot.slane %v410_v62, 6  ;;  %v369_v6 = vsel %vm1594_vm13, %v359_v2, 0  ;;  %v413_v7 = vrot.slane %v409_v3, 6  ;;  %vm1777_vm2 = vcmask 1043456  }
  0xe1   : > { %349 = vrot.lane.b32.xlu1 %v344_v45, %s1351_s24  ;;  %v368_v8 = vsel %vm1766_vm14, %v358_v4, 0  ;;  %v373_v9 = vrot.slane %v369_v6, 6  ;;  %vm1768_vm5 = vcmask 908288   ;;  %vm1770_vm12 = vcmask 769024  }
  0xe2   : > { %v372_v11 = vrot.slane %v368_v8, 6  ;;  %vm1775_vm14 = vcmask 785408   ;;  %vm536_vm9 = vcmask 1041408   ;;  %vm537_vm11 = vcmask 1042432  }
  0xe3   : > { %347 = vrot.lane.b32.xlu0 %v343_v48, %s1351_s24  ;;  %v1356_v40 = vmov 65535   ;;  %vm819_vm4 = vsmask.f32 4352 }
  0xe4   : > { %v538_v41 = vsel %vm536_vm9, 4294967295, %v1356_v40  ;;  %vm1772_vm9 = vcmask 1039360  }
  0xe5   : > { %458 = vrot.lane.b32.xlu1 %v455_v51, %s1352_s14  ;;  %v539_v48 = vsel %vm537_vm11, %v538_v41, 0  ;;  %vm1774_vm11 = vcmask 900096  }
  0xe7   : > { %456 = vrot.lane.b32.xlu0 %v454_v56, %s1352_s14 }
  0xe9   : > { %318 = vrot.lane.b32.xlu1 %v315_v59, %s1353_s25 }
  0xeb   : > { %316 = vrot.lane.b32.xlu0 %v314_v0, %s1353_s25 }
  0xed   : > { %417 = vrot.lane.b32.xlu1 %v414_v5, %s1354_s26 }
  0xef   : > { %415 = vrot.lane.b32.xlu0 %v413_v7, %s1354_s26 }
  0xf1   : > { %376 = vrot.lane.b32.xlu1 %v373_v9, %s1355_s7 }
  0xf3   : > { %374 = vrot.lane.b32.xlu0 %v372_v11, %s1355_s7 }
 0x147   : > { %v392_v12 = vpop.permute.xlu1 %391 }
 0x148   : > { %v394_v13 = vrot.slane %v392_v12, 4 }
 0x149   : > { %v390_v14 = vpop.permute.xlu0 %389 }
 0x14a   : > { %v393_v15 = vrot.slane %v390_v14, 4 }
 0x14b   : > { %v483_v16 = vpop.permute.xlu1 %482 }
 0x14c   : > { %v395_v17 = vsel %vm1777_vm2, %v393_v15, %v394_v13  ;;  %v485_v18 = vrot.slane %v483_v16, 4 }
 0x14d   : > { %v397_v19 = vsel %vm1768_vm5, %v390_v14, %v395_v17  ;;  %v481_v21 = vpop.permute.xlu0 %480  ;;  %vm1771_vm5 = vcmask 1031168  }
 0x14e   : > { %399 = vst [vmem:[#allocation3 + $0x18] sm:$0x33] %v397_v19  ;;  %v484_v22 = vrot.slane %v481_v21, 4 }
 0x14f   : > { %v442_v23 = vpop.permute.xlu1 %441 }
 0x150   : > { %v486_v24 = vsel %vm1777_vm2, %v484_v22, %v485_v18  ;;  %v444_v26 = vrot.slane %v442_v23, 4 }
 0x151   : > { %v488_v27 = vsel %vm1770_vm12, %v481_v21, %v486_v24  ;;  %v440_v28 = vpop.permute.xlu0 %439  ;;  %vm1776_vm12 = vcmask 777216  }
 0x152   : > { %490 = vst [vmem:[#allocation3 + $0x48] sm:$0x33] %v488_v27  ;;  %v443_v30 = vrot.slane %v440_v28, 4 }
 0x153   : > { %v350_v31 = vpop.permute.xlu1 %349 }
 0x154   : > { %v445_v32 = vsel %vm1777_vm2, %v443_v30, %v444_v26  ;;  %v352_v34 = vrot.slane %v350_v31, 4 }
 0x155   : > { %v447_v35 = vsel %vm1775_vm14, %v440_v28, %v445_v32  ;;  %v348_v37 = vpop.permute.xlu0 %347  ;;  %v506_v32 = vld [vmem:[%s1760_s3] sm:$0xf]  ;;  %vm815_vm14 = vcmask 1040384  }
 0x156   : > { %449 = vst [vmem:[#allocation3 + $0x10] sm:$0x33] %v447_v35  ;;  %v351_v38 = vrot.slane %v348_v37, 4 }
 0x157   : > { %v459_v42 = vpop.permute.xlu1 %458 }
 0x158   : > { %v353_v43 = vsel %vm1777_vm2, %v351_v38, %v352_v34  ;;  %v461_v44 = vrot.slane %v459_v42, 4 }
 0x159   : > { %v355_v45 = vsel %vm1771_vm5, %v348_v37, %v353_v43  ;;  %v457_v46 = vpop.permute.xlu0 %456  ;;  %v505_v47 = vld [vmem:[#allocation3 + $0x48] sm:$0x77]  ;;  %vm1773_vm5 = vcmask 916480  }
 0x15a   : > { %357 = vst [vmem:[#allocation3] sm:$0x33] %v355_v45  ;;  %v460_v49 = vrot.slane %v457_v46, 4  ;;  %v1068_v50 = vcombine.high %v505_v47, %v505_v47  ;;  %v1067_v51 = vcombine.low %v505_v47, %v505_v47  ;;  %v593_v16 = vmax.bf16 %v1341_v1, %v505_v47  ;;  %v594_v45 = vld [vmem:[#allocation7] sm:$0xf] }
 0x15b   : > { %v319_v53 = vpop.permute.xlu1 %318 }
 0x15c   : > { %v462_v54 = vsel %vm1777_vm2, %v460_v49, %v461_v44  ;;  %v321_v56 = vrot.slane %v319_v53, 4  ;;  %v544_v57 = vand.u32 %v1068_v50, %v539_v48  ;;  %v541_v58 = vand.u32 %v1067_v51, %v539_v48 }
 0x15d   : > { %v464_v59 = vsel %vm1776_vm12, %v457_v46, %v462_v54  ;;  %v317_v60 = vpop.permute.xlu0 %316  ;;  %v1075_v22 = vcombine.high %v593_v16, %v593_v16  ;;  %v1074_v28 = vcombine.low %v593_v16, %v593_v16  ;;  %vm816_vm12 = vsmask.f32 256 }
 0x15e   : > { %466 = vst [vmem:[#allocation3 + $0x10] sm:$0xcc] %v464_v59  ;;  %v320_v62 = vrot.slane %v317_v60, 4  ;;  %556 = vmatprep.subr.bf16.mxu1 %v544_v57  ;;  %vm817_vm1 = vmand %vm815_vm14, %vm816_vm12  ;;  %vm1817_vm14 = vcmask 908288  }
 0x15f   : > { %557 = vmatpush1.bf16.msra.mxu1 %v541_v58  ;;  %v418_v0 = vpop.permute.xlu1 %417  ;;  %v627_v30 = vand.u32 %v1075_v22, %v539_v48  ;;  %v624_v35 = vand.u32 %v1074_v28, %v539_v48 }
 0x160   : > { %v323_v2 = vsel %vm1777_vm2, %v320_v62, %v321_v56  ;;  %v420_v3 = vrot.slane %v418_v0, 4 }
 0x161   : > { %v325_v4 = vsel %vm1772_vm9, %v317_v60, %v323_v2  ;;  %v416_v5 = vpop.permute.xlu0 %415  ;;  %vm532_vm9 = vcmask 302080   ;;  %v822_v2 = vld [vmem:[#allocation3 + $0x38] sm:$0x11] }
 0x162   : > { %327 = vst [vmem:[#allocation3 + $0x30] sm:$0xcc] %v325_v4  ;;  %v419_v6 = vrot.slane %v416_v5, 4 }
 0x163   : > { %v377_v7 = vpop.permute.xlu1 %376 }
 0x164   : > { %v421_v8 = vsel %vm1777_vm2, %v419_v6, %v420_v3  ;;  %v379_v9 = vrot.slane %v377_v7, 4 }
 0x165   : > { %v423_v11 = vsel %vm1774_vm11, %v416_v5, %v421_v8  ;;  %v375_v12 = vpop.permute.xlu0 %374  ;;  %v504_v18 = vld [vmem:[#allocation3 + $0x10] sm:$0xff]  ;;  %vm686_vm11 = vcmask 1047556  }
 0x166   : > { %425 = vst [vmem:[#allocation3 + $0x18] sm:$0xcc] %v423_v11  ;;  %v378_v13 = vrot.slane %v375_v12, 4  ;;  %v592_v34 = vmax.bf16 %v1341_v1, %v504_v18 }
 0x168   : > { %v380_v14 = vsel %vm1777_vm2, %v378_v13, %v379_v9  ;;  %vm818_vm2 = vcmask 1044484  }
 0x169   : > { %v382_v15 = vsel %vm1773_vm5, %v375_v12, %v380_v14  ;;  %v501_v23 = vld [vmem:[#allocation3 + $0x30] sm:$0xff]  ;;  %vm685_vm5 = vcmask 1043592   ;;  %vm820_vm13 = vmand %vm818_vm2, %vm819_vm4  ;;  %vm1813_vm4 = vcmp.ne.s16.totalorder %v1590_v61, 0  ;;  %vm889_vm2 = vcmask 1044480  }
 0x16a   : > { %384 = vst [vmem:[#allocation3] sm:$0xcc] %v382_v15  ;;  %v589_v41 = vmax.bf16 %v1341_v1, %v501_v23  ;;  %vm821_vm6 = vmor %vm820_vm13, %vm817_vm1  ;;  %vm1811_vm1 = vcmp.ne.s16.totalorder %v1554_v36, 0 }
 0x16b   : > { %v823_v4 = vsel %vm821_vm6, 1065369472, %v822_v2  ;;  %vm1814_vm6 = vcmask 1043456  }
 0x16c   : > { %824 = vst [vmem:[#allocation3 + $0x38] sm:$0x11] %v823_v4  ;;  %vm1816_vm13 = vmmov %vm1814_vm6 }
 0x16d   : > { %v503_v17 = vld [vmem:[#allocation3 + $0x18] sm:$0xff] }
 0x16e   : > { %v1066_v19 = vcombine.high %v503_v17, %v504_v18  ;;  %v1065_v21 = vcombine.low %v503_v17, %v504_v18  ;;  %v591_v31 = vmax.bf16 %v1341_v1, %v503_v17 }
 0x170   : > { %558 = vmatprep.subr.bf16.mxu1 %v1066_v19  ;;  %v1073_v37 = vcombine.high %v591_v31, %v592_v34  ;;  %v1072_v42 = vcombine.low %v591_v31, %v592_v34 }
 0x171   : > { %559 = vmatpush1.bf16.msra.mxu1 %v1065_v21  ;;  %v502_v24 = vld [vmem:[#allocation3] sm:$0xff] }
 0x172   : > { %v1064_v26 = vcombine.high %v501_v23, %v502_v24  ;;  %v1063_v27 = vcombine.low %v501_v23, %v502_v24  ;;  %v590_v38 = vmax.bf16 %v1341_v1, %v502_v24 }
 0x174   : > { %560 = vmatprep.subr.bf16.mxu1 %v1064_v26  ;;  %v1071_v43 = vcombine.high %v589_v41, %v590_v38  ;;  %v1070_v44 = vcombine.low %v589_v41, %v590_v38 }
 0x175   : > { %561 = vmatpush1.bf16.msra.mxu1 %v1063_v27 }
 0x176   : > { %639 = vmatprep.subr.bf16.mxu1 %v627_v30 }
 0x178   : > { %1069 = vmatmul.mubr.msk.bf16.vlgmr.msra.gmra.mxu1 %vm532_vm9, %v506_v32  ;;  %v834_v32 = vld [vmem:[#allocation3 + $0x38] sm:$0x11] }
 0x179   : > { %640 = vmatpush1.bf16.msra.mxu1 %v624_v35  ;;  %661 = vmatprep.mubr.bf16.mxu1 %v1341_v1 }
 0x17a   : > { %641 = vmatprep.subr.bf16.mxu1 %v1073_v37 }
 0x17d   : > { %642 = vmatpush1.bf16.msra.mxu1 %v1072_v42 }
 0x17e   : > { %643 = vmatprep.subr.bf16.mxu1 %v1071_v43 }
 0x181   : > { %644 = vmatpush1.bf16.msra.mxu1 %v1070_v44 }
 0x184   : > { %1076 = vmatmul.mubr.msk.bf16.vlgmr.msra.gmra.mxu1 %vm532_vm9, %v594_v45  ;;  %vm687_vm9 = vmor %vm686_vm11, %vm685_vm5  ;;  %vm1820_vm11 = vcmask 769024  }
 0x185   : > { %vm1818_vm5 = vmmov %vm1814_vm6 }
 0x186   : > { %v890_v31 = vsel %vm1818_vm5, 4294967295, %v1356_v40  ;;  %vm1819_vm12 = vmmov %vm1818_vm5 }
 0x187   : > { %v891_v42 = vsel %vm889_vm2, %v890_v31, 0 }
 0x238   : > { %v1639_v46 = vpop.f32.mrf.mxu1 }
 0x23a   : > { %v1641_v47 = vpop.f32.mrf.mxu1 }
 0x23c   : > { %v584_v48 = vpop.f32.mrf.mxu1 }
 0x23e   : > { %v585_v49 = vpop.f32.mrf.mxu1 }
 0x244   : > { %v663_v50 = vpop.f32.mrf.mxu1 }
 0x245   : > { %v670_v53 = vmax.f32 %v663_v50, 0.0 }
 0x246   : > { %v665_v51 = vpop.f32.mrf.mxu1 }
 0x247   : > { %v671_v54 = vmax.f32 %v665_v51, 0.0 }
 0x248   : > { %v667_v1 = vpop.f32.mrf.mxu1 }
 0x249   : > { %v1096_v56 = vpack.c.bf16 %v671_v54, %v670_v53 }
 0x24a   : > { %v668_v57 = vpop.f32.mrf.mxu1 }
 0x24b   : > { %679 = vrot.lane.b32.xlu0 %v1096_v56, %s1343_s23  ;;  %s1097_s23 = sshll.u32 %s1404_s19, 8  ;;  %s946_s19 = scalar_lea.sflag [#allocation6], %s1501_s28 }
 0x2bd   : > { %v680_v58 = vpop.permute.xlu0 %679 }
 0x2be   : > { %v681_v59 = vrot.slane %v680_v58, 4 }
 0x2c0   : > { %v682_v60 = vsel %vm292_vm10, %v681_v59, %v680_v58  ;;  %689 = vst.msk [vmem:[#allocation2 + $0x8] sm:$0xf] %vm274_vm0, %v681_v59  ;;  %vm1807_vm0 = vcmp.ne.s16.totalorder %v1530_v20, 0  ;;  %vm1809_vm10 = vcmp.ne.s16.totalorder %v1581_v52, 0 }
 0x2c1   : > { %688 = vst.msk [vmem:[#allocation2] sm:$0xff] %vm687_vm9, %v682_v60  ;;  %vm1821_vm9 = vmmov %vm1818_vm5 }
 0x2c7   : > { %v786_v62 = vld [vmem:[#allocation2 + $0x8] sm:$0xf] }
 0x2c8   : > { %791 = vrot.lane.b32.xlu0 %v786_v62, %s1352_s14  ;;  %v785_v0 = vld [vmem:[#allocation2] sm:$0xff]  ;;  %v740_v3 = vld [vmem:[#allocation2 + $0x8] sm:$0xf] }
 0x2c9   : > { %789 = vrot.lane.b32.xlu1 %v785_v0, %s1352_s14  ;;  %v1650_v5 = vsel %vm1519_vm7, %v785_v0, 0  ;;  %v800_v6 = vld [vmem:[#allocation2 + $0x8] sm:$0xf]  ;;  %v801_v8 = vsel %vm1807_vm0, %v785_v0, 0  ;;  %vm1808_vm7 = vcmp.ne.s16.totalorder %v1541_v29, 0  ;;  %v755_v20 = vsel %vm1809_vm10, %v785_v0, 0 }
 0x2ca   : > { %692 = vst [vmem:[#allocation3 + $0x30] sm:$0xff] %v1650_v5  ;;  %v802_v7 = vsel %vm1533_vm15, %v800_v6, 0  ;;  %v770_v9 = vld [vmem:[#allocation2 + $0x8] sm:$0xf]  ;;  %v771_v11 = vsel %vm1808_vm7, %v785_v0, 0  ;;  %vm1810_vm15 = vnez %v1800_v39  ;;  %v709_v29 = vsel %vm1811_vm1, %v785_v0, 0  ;;  %vm1823_vm7 = vmmov %vm1818_vm5 }
 0x2cb   : > { %v772_v10 = vsel %vm1546_vm3, %v770_v9, 0  ;;  %v754_v12 = vld [vmem:[#allocation2 + $0x8] sm:$0xf]  ;;  %vm1812_vm3 = vnez %v1806_v63  ;;  %v725_v52 = vsel %vm1813_vm4, %v785_v0, 0  ;;  %vm1822_vm0 = vcmask 785408  }
 0x2cc   : > { %745 = vrot.lane.b32.xlu0 %v740_v3, %s1348_s10  ;;  %v756_v25 = vsel %vm1583_vm8, %v754_v12, 0  ;;  %v708_v13 = vld [vmem:[#allocation2 + $0x8] sm:$0xf]  ;;  %vm1815_vm8 = vcmask 777216   ;;  %vm1824_vm10 = vcmask 900096   ;;  %vm1826_vm1 = vcmask 1031168  }
 0x2cd   : > { %743 = vrot.lane.b32.xlu1 %v785_v0, %s1348_s10  ;;  %v710_v33 = vsel %vm1810_vm15, %v708_v13, 0  ;;  %v724_v14 = vld [vmem:[#allocation2 + $0x8] sm:$0xf]  ;;  %vm1825_vm15 = vmmov %vm1818_vm5  ;;  %vm1828_vm4 = vcmask 916480   ;;  %s1714_s10 = scalar_lea.hbm %s1761_s4, %s1097_s23 }
 0x2ce   : > { %v726_v55 = vsel %vm1812_vm3, %v724_v14, 0  ;;  %v694_v39 = vld [vmem:[#allocation2 + $0x8] sm:$0xf]  ;;  %vm1827_vm3 = vmmov %vm1818_vm5 }
 0x2d0   : > { %807 = vrot.lane.b32.xlu0 %v802_v7, %s1349_s11 }
 0x2d1   : > { %805 = vrot.lane.b32.xlu1 %v801_v8, %s1349_s11  ;;  %s1268_s11 = scalar_lea.vmem %s1716_s30, 256 }
 0x2d2   : > { %p1269_p13 = scmp.ne.s32.totalorder %s1716_s30, %s1268_s11 }
 0x2d4   : > { %777 = vrot.lane.b32.xlu0 %v772_v10, %s1350_s20  ;;  %p1270_p1 = pnand %p1269_p13, %p1831_p0 }
 0x2d5   : > { %775 = vrot.lane.b32.xlu1 %v771_v11, %s1350_s20  ;;  %s1357_s20 = smov [#allocation10]  }
 0x2d6   : > { %p1271_p2 = pneg %p1270_p1 }
 0x2d8   : > { %761 = vrot.lane.b32.xlu0 %v756_v25, %s1354_s26 }
 0x2d9   : > { %759 = vrot.lane.b32.xlu1 %v755_v20, %s1354_s26 }
 0x2dc   : > { %715 = vrot.lane.b32.xlu0 %v710_v33, %s1351_s24 }
 0x2dd   : > { %713 = vrot.lane.b32.xlu1 %v709_v29, %s1351_s24  ;;  %s1272_s24 = sshll.u32 %s1357_s20, 4  ;;  %s1273_s24 = int_to_ptr.vmem [resolvable:$false] %s1272_s24 }
 0x2de   : > { %s1274_s14 = scalar_lea.vmem %s1273_s24, 512  ;;  %p1275_p4 = scmp.lt.s32.totalorder %s1716_s30, %s1273_s24 }
 0x2df   : > { %p1276_p6 = scmp.lt.s32.totalorder %s1274_s14, %s1268_s11 }
 0x2e0   : > { %731 = vrot.lane.b32.xlu0 %v726_v55, %s1355_s7 }
 0x2e1   : > { %729 = vrot.lane.b32.xlu1 %v725_v52, %s1355_s7  ;;  %p1277_p8 = por %p1276_p6, %p1275_p4 }
 0x2e3   : > { %p1278_p12 = pnand %p1277_p8, %p1271_p2 }
 0x2e4   : > { %699 = vrot.lane.b32.xlu0 %v694_v39, %s1353_s25 }
 0x2e5   : > { %697 = vrot.lane.b32.xlu1 %v785_v0, %s1353_s25 }
 0x33a   : > { %v792_v36 = vpop.permute.xlu0 %791 }
 0x33b   : > { %v794_v15 = vrot.slane %v792_v36, 4  ;;  %v790_v16 = vpop.permute.xlu1 %789 }
 0x33c   : > { %v793_v17 = vrot.slane %v790_v16, 4 }
 0x33e   : > { %v795_v18 = vsel %vm1814_vm6, %v793_v17, %v794_v15  ;;  %v746_v63 = vpop.permute.xlu0 %745  ;;  %vm1829_vm6 = vmmov %vm1827_vm3 }
 0x33f   : > { %v796_v19 = vsel %vm1815_vm8, %v790_v16, %v795_v18  ;;  %v748_v21 = vrot.slane %v746_v63, 4  ;;  %v744_v22 = vpop.permute.xlu1 %743  ;;  %vm1830_vm8 = vcmask 1039360   ;;  %v835_v16 = vld [vmem:[#allocation9] sm:$0xf] }
 0x340   : > { %v747_v61 = vrot.slane %v744_v22, 4 }
 0x342   : > { %v749_v23 = vsel %vm1816_vm13, %v747_v61, %v748_v21  ;;  %v808_v24 = vpop.permute.xlu0 %807  ;;  %vm884_vm13 = vcmask 596992  }
 0x343   : > { %v750_v26 = vsel %vm1817_vm14, %v744_v22, %v749_v23  ;;  %v810_v27 = vrot.slane %v808_v24, 4  ;;  %v806_v28 = vpop.permute.xlu1 %805 }
 0x344   : > { %752 = vst [vmem:[#allocation3 + $0x48] sm:$0xff] %v750_v26  ;;  %v809_v30 = vrot.slane %v806_v28, 4 }
 0x346   : > { %v811_v34 = vsel %vm1819_vm12, %v809_v30, %v810_v27  ;;  %v778_v35 = vpop.permute.xlu0 %777 }
 0x347   : > { %v812_v37 = vsel %vm1820_vm11, %v806_v28, %v811_v34  ;;  %v780_v38 = vrot.slane %v778_v35, 4  ;;  %v776_v41 = vpop.permute.xlu1 %775 }
 0x348   : > { %v779_v43 = vrot.slane %v776_v41, 4  ;;  %v1087_v44 = vcombine.high %v812_v37, %v834_v32  ;;  %v1086_v45 = vcombine.low %v812_v37, %v834_v32 }
 0x34a   : > { %v781_v48 = vsel %vm1821_vm9, %v779_v43, %v780_v38  ;;  %v762_v49 = vpop.permute.xlu0 %761  ;;  %v896_v50 = vand.u32 %v1087_v44, %v891_v42  ;;  %v893_v51 = vand.u32 %v1086_v45, %v891_v42 }
 0x34b   : > { %v782_v53 = vsel %vm1822_vm0, %v776_v41, %v781_v48  ;;  %v764_v40 = vrot.slane %v762_v49, 4  ;;  %v760_v54 = vpop.permute.xlu1 %759 }
 0x34c   : > { %v763_v1 = vrot.slane %v760_v54, 4  ;;  %904 = vmatprep.subr.bf16.mxu0 %v896_v50  ;;  %v1085_v56 = vcombine.high %v782_v53, %v796_v19  ;;  %v1084_v0 = vcombine.low %v782_v53, %v796_v19 }
 0x34d   : > { %905 = vmatpush1.bf16.msra.mxu0 %v893_v51 }
 0x34e   : > { %v765_v57 = vsel %vm1823_vm7, %v763_v1, %v764_v40  ;;  %v716_v58 = vpop.permute.xlu0 %715  ;;  %906 = vmatprep.subr.bf16.mxu0 %v1085_v56 }
 0x34f   : > { %v766_v59 = vsel %vm1824_vm10, %v760_v54, %v765_v57  ;;  %v718_v60 = vrot.slane %v716_v58, 4  ;;  %v714_v62 = vpop.permute.xlu1 %713 }
 0x350   : > { %v717_v2 = vrot.slane %v714_v62, 4  ;;  %v1083_v3 = vcombine.high %v750_v26, %v766_v59  ;;  %v1082_v10 = vcombine.low %v750_v26, %v766_v59 }
 0x351   : > { %907 = vmatpush1.bf16.msra.mxu0 %v1084_v0 }
 0x352   : > { %v719_v4 = vsel %vm1825_vm15, %v717_v2, %v718_v60  ;;  %v732_v6 = vpop.permute.xlu0 %731  ;;  %908 = vmatprep.subr.bf16.mxu0 %v1083_v3 }
 0x353   : > { %v720_v7 = vsel %vm1826_vm1, %v714_v62, %v719_v4  ;;  %v734_v8 = vrot.slane %v732_v6, 4  ;;  %v730_v9 = vpop.permute.xlu1 %729 }
 0x354   : > { %722 = vst [vmem:[#allocation3 + $0x18] sm:$0xff] %v720_v7  ;;  %v733_v11 = vrot.slane %v730_v9, 4 }
 0x355   : > { %909 = vmatpush1.bf16.msra.mxu0 %v1082_v10 }
 0x356   : > { %v735_v12 = vsel %vm1827_vm3, %v733_v11, %v734_v8  ;;  %v700_v25 = vpop.permute.xlu0 %699 }
 0x357   : > { %v736_v20 = vsel %vm1828_vm4, %v730_v9, %v735_v12  ;;  %v702_v13 = vrot.slane %v700_v25, 4  ;;  %v698_v33 = vpop.permute.xlu1 %697 }
 0x358   : > { %738 = vst [vmem:[#allocation3 + $0x10] sm:$0xff] %v736_v20  ;;  %v701_v29 = vrot.slane %v698_v33, 4  ;;  %v1081_v14 = vcombine.high %v720_v7, %v736_v20  ;;  %v1080_v55 = vcombine.low %v720_v7, %v736_v20 }
 0x35a   : > { %v703_v52 = vsel %vm1829_vm6, %v701_v29, %v702_v13  ;;  %910 = vmatprep.subr.bf16.mxu0 %v1081_v14 }
 0x35b   : > { %v704_v39 = vsel %vm1830_vm8, %v698_v33, %v703_v52  ;;  %911 = vmatpush1.bf16.msra.mxu0 %v1080_v55 }
 0x35c   : > { %706 = vst [vmem:[#allocation3] sm:$0xff] %v704_v39  ;;  %v1079_v36 = vcombine.high %v1650_v5, %v704_v39  ;;  %v1078_v15 = vcombine.low %v1650_v5, %v704_v39 }
 0x35e   : > { %912 = vmatprep.subr.bf16.mxu0 %v1079_v36 }
 0x35f   : > { %913 = vmatpush1.bf16.msra.mxu0 %v1078_v15 }
 0x362   : > { %1088 = vmatmul.mubr.msk.bf16.vlgmr.msra.gmra.mxu0 %vm884_vm13, %v835_v16 }
 0x422   : > { %v932_v17 = vpop.f32.mrf.mxu0 }
 0x423   : > { %v941_v18 = vadd.f32 %v932_v17, %v1639_v46 }
 0x424   : > { %v934_v63 = vpop.f32.mrf.mxu0 }
 0x425   : > { %943 = vst [vmem:[%s238_s27] sm:$0xff] %v941_v18  ;;  %v942_v19 = vadd.f32 %v934_v63, %v1641_v47 }
 0x426   : > { %v936_v5 = vpop.f32.mrf.mxu0 }
 0x427   : > { %944 = vst [vmem:[%s238_s27 + $0x8] sm:$0xff] %v942_v19 }
 0x428   : > { %v937_v21 = vpop.f32.mrf.mxu0 }
 0x429   : > { %1281 = shalt.err (!%p1278_p12)
}
 0x42a   : > { %s1282_s25 = scalar_lea.hbm %s1714_s10, 256  ;;  %s1286_s7 = scalar_lea.hbm %s1761_s4, 512 }
 0x42b   : > { %p1283_p3 = scmp.ne.s32.totalorder %s1714_s10, %s1282_s25  ;;  %p1287_p5 = scmp.lt.s32.totalorder %s1714_s10, %s1761_s4 }
 0x42c   : > { %p1288_p9 = scmp.lt.s32.totalorder %s1286_s7, %s1282_s25 }
 0x42d   : > { %p1284_p7 = pnand %p1283_p3, %p1831_p0 }
 0x42e   : > { %p1289_p11 = por %p1288_p9, %p1287_p5 }
 0x42f   : > { %p1285_p10 = pneg %p1284_p7 }
 0x431   : > { %p1290_p13 = pnand %p1289_p11, %p1285_p10 }
 0x433   : > { %1293 = shalt.err (!%p1290_p13)
}
 0x434   : > { %1108 = dma.vmem_to_hbm [thread:$0]  (%p1831_p0), %s1716_s30, 256, %s1714_s10, %s946_s19  }
 0x435 PF: > { %s972_s21 = sand.u32 1, %s1324_s15   ;;  %p1832_p1 = scmp.ne.s32.totalorder %s1783_s22, 0 }
 0x436   : > { %p1833_p2 = scmp.ge.s32.totalorder %s1336_s18, 2  ;;  %s973_s23 = scalar_lea.sflag [#allocation6], %s972_s21 }
 0x438   : > { %p1122_p4 = pnand %p1833_p2, %p1832_p1 }
 0x43a   : > { %p1123_p6 = pneg %p1122_p4 }
 0x43c   : > { %1319 = dma.done.wait (%p1123_p6), %s973_s23, 256  }
 0x43d   : > { %1321 = vsyncadd (%p1123_p6), %s973_s23, 4294967040  ;;  %p18_p8 = scmp.ge.s32.totalorder %s1437_s29, 4   ;;  %s1834_s15 = smov %s1328_s16 }
 0x43e   : > { %s1835_s16 = smov %s1332_s17  ;;  %s1836_s17 = smov %s1464_s12 }
 0x43f   : > { %s1837_s18 = smov %s1437_s29  ;;  %20 = sbr.rel (!%p18_p8) target bundleno = 6 (0x6), region = 89 }
 0x444   :  { %978 = vsyncpa [#allocation5], 1 }
 0x445   :  { %980 = vsyncpa [#allocation5 + $0x1], 1 }
 0x446   :  { %981 = vsyncpa [#allocation8], 1 }
 0x447   :  { %982 = vsyncpa [#allocation6], 1 }
 0x448   :  { %984 = vsyncpa [#allocation6 + $0x1], 1 }

</bundles_post_ra>
